<compile_context>
chip_gen: v7x
topology: tpu7x:2x2x1
jax: 0.10.0
libtpu: 0.0.40
codegen_flags: <defaults>
</compile_context>

<pallas_src>
import functools

import jax
import jax.numpy as jnp
import numpy as np
from jax import lax
from jax.experimental import pallas as pl
from jax.experimental.pallas import tpu as pltpu

_OUT_LANES = 128  # packed output width: scores in lanes [0, L), NLL in lane L


def _round_up(x, m):
    return (x + m - 1) // m * m


def _bilinear_loss_kernel(e1_ref, e2_ref, mcat_ref, sel_ref, labels_ref, out_ref,
                          *, num_labels, normalization):
    """One (tb, D) batch tile -> (tb, 128) packed [scores | nll | zeros]."""
    e1f = e1_ref[...].astype(jnp.float32)
    if normalization:
        # torch.nn.functional.normalize(p=2, dim=1, eps=1e-12):
        #   x / max(||x||, eps)  ==  x * min(rsqrt(sum x^2), 1/eps)
        e2f = e2_ref[...].astype(jnp.float32)
        inv1 = jnp.minimum(lax.rsqrt(jnp.sum(e1f * e1f, axis=1, keepdims=True)), 1e12)
        inv2 = jnp.minimum(lax.rsqrt(jnp.sum(e2f * e2f, axis=1, keepdims=True)), 1e12)
        e1f = e1f * inv1
        e2_op = (e2f * inv2).astype(e2_ref.dtype)   # stream dtype for the MXU
    else:
        e2_op = e2_ref[...]

    # One wide MXU matmul over all labels: (tb, D) @ (D, L*D) -> (tb, L*D),
    # accumulating in f32 regardless of the streaming dtype.
    t = jnp.dot(e2_op, mcat_ref[...], preferred_element_type=jnp.float32)

    # Fused e1-weighted per-label reduction: multiply by e1 tiled across L*D
    # lanes once, then one matmul against the block-diagonal ones selector
    # (L*D, 128).  Result lands directly in a lane-dense (tb, 128) slab with
    # lanes >= L equal to zero — no per-label slices / XLU sums / concatenate.
    prod = t * jnp.tile(e1f, (1, num_labels))
    packed = jnp.dot(prod, sel_ref[...], preferred_element_type=jnp.float32)

    tb = packed.shape[0]
    col = lax.broadcasted_iota(jnp.int32, (tb, _OUT_LANES), 1)
    valid = col < num_labels

    # Per-row cross-entropy NLL (mean reduction happens outside the kernel).
    masked = jnp.where(valid, packed, -jnp.inf)
    m = jnp.max(masked, axis=1, keepdims=True)
    lse = m + jnp.log(jnp.sum(jnp.exp(masked - m), axis=1, keepdims=True))   # (tb, 1)
    label_ids = labels_ref[...]                                              # (tb, 1) int32
    picked = jnp.sum(jnp.where(col == label_ids, packed, 0.0),
                     axis=1, keepdims=True)                                  # (tb, 1)
    nll = lse - picked

    # Pack the NLL into lane `num_labels` of the already lane-dense scores slab.
    out_ref[...] = packed + jnp.where(col == num_labels, nll, 0.0)


def bilinear_loss_forward(e1, e2, Us, labels, *, sim_method='ADD',
                          normalization='', batch_tile=1024, compute_dtype=None):
    """Returns (scores (B, L) float32, scalar mean cross-entropy loss)."""
    B, D = e1.shape
    L = int(Us.shape[0])
    assert L + 1 <= _OUT_LANES, "num_labels must fit the packed 128-lane output"

    # ---- hoisted, input-independent sim-matrix prep (f32 for precision) -----
    Us32 = Us.astype(jnp.float32)
    if sim_method == 'ADD':
        Ms = (Us32 + jnp.swapaxes(Us32, 1, 2)) * 0.5
    elif sim_method == 'MUL':
        Ms = jnp.einsum('lij,lkj->lik', Us32, Us32)
    else:
        Ms = Us32

    # Streaming dtype for e1/e2/M_cat (bf16 halves HBM traffic; f32 acc kept).
    op_dtype = jnp.dtype(compute_dtype) if compute_dtype is not None else jnp.dtype(e1.dtype)
    # Fuse the L (D, D) RHS matrices into one (D, L*D) weight (one MXU push).
    M_cat = jnp.transpose(Ms, (1, 0, 2)).reshape(D, L * D).astype(op_dtype)
    e1 = e1.astype(op_dtype)
    e2 = e2.astype(op_dtype)

    # Block-diagonal ones selector: column l sums lanes [l*D, (l+1)*D).
    sel = (jnp.arange(L * D, dtype=jnp.int32)[:, None] // D
           == jnp.arange(_OUT_LANES, dtype=jnp.int32)[None, :]).astype(jnp.float32)

    # ---- batch tiling --------------------------------------------------------
    sub = max(8, 32 // op_dtype.itemsize)          # sublane multiple: 8/16/32
    tb = max(sub, _round_up(min(batch_tile, B), sub))
    # Keep >= 2 grid steps when the batch allows, so the "parallel" batch axis
    # can be split across v7x's two TensorCores.
    if _round_up(B, sub) >= 2 * sub and _round_up(B, tb) // tb < 2:
        tb = _round_up((_round_up(B, sub) + 1) // 2, sub)
    B_pad = _round_up(B, tb)
    nb = B_pad // tb

    e1p = jnp.pad(e1, ((0, B_pad - B), (0, 0)))
    e2p = jnp.pad(e2, ((0, B_pad - B), (0, 0)))
    labels_p = jnp.pad(jnp.asarray(labels).reshape(-1).astype(jnp.int32),
                       (0, B_pad - B)).reshape(B_pad, 1)

    kernel = functools.partial(
        _bilinear_loss_kernel,
        num_labels=L,
        normalization=bool(normalization),
    )

    # VMEM budget estimate; cap at 56 MiB to keep headroom on v7x (64 MiB phys).
    est = (4 * tb * D * op_dtype.itemsize          # e1/e2 tiles, double-buffered
           + 2 * D * L * D * op_dtype.itemsize     # M_cat (worst case 2 buffers)
           + 2 * L * D * _OUT_LANES * 4            # selector
           + 2 * tb * _OUT_LANES * 4               # packed output, double-buffered
           + 2 * tb * 4                            # labels
           + 6 * tb * L * D * 4)                   # in-kernel f32 intermediates
    vmem_limit = int(min(56 * 1024 * 1024, max(32 * 1024 * 1024, 2 * est)))

    def build(single_buffer_consts):
        const_kw = {'pipeline_mode': pl.Buffered(1)} if single_buffer_consts else {}
        in_specs = [
            pl.BlockSpec((tb, D), lambda i: (i, 0)),                          # e1 tile
            pl.BlockSpec((tb, D), lambda i: (i, 0)),                          # e2 tile
            pl.BlockSpec((D, L * D), lambda i: (0, 0), **const_kw),           # M_cat (VMEM-resident)
            pl.BlockSpec((L * D, _OUT_LANES), lambda i: (0, 0), **const_kw),  # selector (VMEM-resident)
            pl.BlockSpec((tb, 1), lambda i: (i, 0)),                          # labels tile
        ]
        return pl.pallas_call(
            kernel,
            out_shape=jax.ShapeDtypeStruct((B_pad, _OUT_LANES), jnp.float32),
            grid=(nb,),
            in_specs=in_specs,
            out_specs=pl.BlockSpec((tb, _OUT_LANES), lambda i: (i, 0)),
            compiler_params=pltpu.CompilerParams(
                dimension_semantics=("parallel",),
                vmem_limit_bytes=vmem_limit,
            ),
        )

    try:
        packed = build(True)(e1p, e2p, M_cat, sel, labels_p)
    except Exception:
        # Fallback: default double-buffering if pl.Buffered(1) is rejected here.
        packed = build(False)(e1p, e2p, M_cat, sel, labels_p)

    scores = packed[:B, :L]
    loss = jnp.sum(packed[:B, L]) / B        # nn.CrossEntropyLoss mean reduction
    return scores, loss


def _reference_forward(e1, e2, Us, labels, sim_method='ADD', normalization=''):
    e1 = jnp.asarray(e1, jnp.float32)
    e2 = jnp.asarray(e2, jnp.float32)
    if normalization:
        e1 = e1 / jnp.maximum(jnp.linalg.norm(e1, axis=1, keepdims=True), 1e-12)
        e2 = e2 / jnp.maximum(jnp.linalg.norm(e2, axis=1, keepdims=True), 1e-12)
    Us = jnp.asarray(Us, jnp.float32)
    if sim_method == 'ADD':
        Ms = (Us + jnp.swapaxes(Us, 1, 2)) / 2
    elif sim_method == 'MUL':
        Ms = jnp.einsum('lij,lkj->lik', Us, Us)
    else:
        Ms = Us
    scores = jnp.stack(
        [jnp.sum(e1 * (e2 @ Ms[l]), axis=1) for l in range(Us.shape[0])], axis=1)
    logp = jax.nn.log_softmax(scores, axis=1)
    loss = -jnp.mean(jnp.take_along_axis(logp, labels[:, None].astype(jnp.int32),
                                         axis=1))
    return scores, loss


if __name__ == "__main__":
    B = 8            # batch of sentence pairs
    D = 128          # sentence embedding dimension
    L = 3            # num_labels (e.g. NLI: entailment / neutral / contradiction)

    key = jax.random.PRNGKey(0)
    k_e1, k_e2, k_us, k_lab = jax.random.split(key, 4)

    e1 = jax.random.normal(k_e1, (B, D), dtype=jnp.float32)
    e2 = jax.random.normal(k_e2, (B, D), dtype=jnp.float32)
    Us = jax.random.normal(k_us, (L, D, D), dtype=jnp.float32)   # ParameterList of (D, D)
    labels = jax.random.randint(k_lab, (B,), 0, L, dtype=jnp.int32)

    # 1) sim_method='ADD', no normalization, f32 streaming (default config).
    scores, loss = bilinear_loss_forward(e1, e2, Us, labels,
                                         sim_method='ADD', normalization='')
    jax.block_until_ready((scores, loss))
    ref_scores, ref_loss = _reference_forward(e1, e2, Us, labels, 'ADD', '')
    np.testing.assert_allclose(np.asarray(scores), np.asarray(ref_scores),
                               rtol=1e-4, atol=1e-4)
    np.testing.assert_allclose(np.asarray(loss), np.asarray(ref_loss),
                               rtol=1e-4, atol=1e-4)

    # 2) sim_method='MUL' with L2 normalization, f32.
    scores_m, loss_m = bilinear_loss_forward(e1, e2, Us, labels,
                                             sim_method='MUL', normalization='l2')
    jax.block_until_ready((scores_m, loss_m))
    ref_scores_m, ref_loss_m = _reference_forward(e1, e2, Us, labels, 'MUL', 'l2')
    np.testing.assert_allclose(np.asarray(scores_m), np.asarray(ref_scores_m),
                               rtol=1e-4, atol=1e-3)
    np.testing.assert_allclose(np.asarray(loss_m), np.asarray(ref_loss_m),
                               rtol=1e-4, atol=1e-4)

    # 3) bf16 operand streaming (halved HBM traffic); compare against a
    #    reference computed on the same bf16-quantized operands.
    scores_b, loss_b = bilinear_loss_forward(e1, e2, Us, labels, sim_method='ADD',
                                             normalization='',
                                             compute_dtype=jnp.bfloat16)
    jax.block_until_ready((scores_b, loss_b))
    e1_q = e1.astype(jnp.bfloat16).astype(jnp.float32)
    e2_q = e2.astype(jnp.bfloat16).astype(jnp.float32)
    Ms_q = ((Us + jnp.swapaxes(Us, 1, 2)) * 0.5).astype(jnp.bfloat16).astype(jnp.float32)
    ref_scores_b = jnp.stack(
        [jnp.sum(e1_q * (e2_q @ Ms_q[l]), axis=1) for l in range(L)], axis=1)
    ref_loss_b = -jnp.mean(jnp.take_along_axis(
        jax.nn.log_softmax(ref_scores_b, axis=1), labels[:, None], axis=1))
    np.testing.assert_allclose(np.asarray(scores_b), np.asarray(ref_scores_b),
                               rtol=2e-3, atol=5e-2)
    np.testing.assert_allclose(np.asarray(loss_b), np.asarray(ref_loss_b),
                               rtol=2e-3, atol=5e-2)

    # 4) Multi-tile grid with padding (B=40 -> two 24-row tiles, 8 padded rows);
    #    also exercises the "keep >= 2 grid steps for v7x" tile split.
    B2 = 40
    k5, k6, k7 = jax.random.split(jax.random.PRNGKey(1), 3)
    e1b = jax.random.normal(k5, (B2, D), dtype=jnp.float32)
    e2b = jax.random.normal(k6, (B2, D), dtype=jnp.float32)
    lab2 = jax.random.randint(k7, (B2,), 0, L, dtype=jnp.int32)
    s2, l2 = bilinear_loss_forward(e1b, e2b, Us, lab2,
                                   sim_method='ADD', normalization='')
    jax.block_until_ready((s2, l2))
    rs2, rl2 = _reference_forward(e1b, e2b, Us, lab2, 'ADD', '')
    np.testing.assert_allclose(np.asarray(s2), np.asarray(rs2), rtol=1e-4, atol=1e-4)
    np.testing.assert_allclose(np.asarray(l2), np.asarray(rl2), rtol=1e-4, atol=1e-4)

    print("KERNEL_OK")
</pallas_src>

<mosaic_0001>
module attributes {stable_mosaic.version = 11 : i64} {
  func.func @_bilinear_loss_kernel(%arg0: i32, %arg1: memref<8x128xf32, #tpu.memory_space<vmem>>, %arg2: memref<8x128xf32, #tpu.memory_space<vmem>>, %arg3: memref<128x384xf32, #tpu.memory_space<vmem>>, %arg4: memref<384x128xf32, #tpu.memory_space<vmem>>, %arg5: memref<8x1xi32, #tpu.memory_space<vmem>>, %arg6: memref<8x128xf32, #tpu.memory_space<vmem>>) attributes {dimension_semantics = [#tpu.dimension_semantics<parallel>], iteration_bounds = array<i64: 1>, scalar_prefetch = 0 : i64, scratch_operands = 0 : i64, tpu.core_type = #tpu.core_type<tc>, window_params = [{transform_indices = @transform_0, window_bounds = array<i64: 8, 128>}, {transform_indices = @transform_1, window_bounds = array<i64: 8, 128>}, {pipeline_mode = #tpu.pipeline_mode<synchronous>, transform_indices = @transform_2, window_bounds = array<i64: 128, 384>}, {pipeline_mode = #tpu.pipeline_mode<synchronous>, transform_indices = @transform_3, window_bounds = array<i64: 384, 128>}, {transform_indices = @transform_4, window_bounds = array<i64: 8, 1>}, {transform_indices = @transform_5, window_bounds = array<i64: 8, 128>}]} {
    %c0 = arith.constant 0 : index
    %c0_0 = arith.constant 0 : index
    %0 = vector.load %arg1[%c0, %c0_0] : memref<8x128xf32, #tpu.memory_space<vmem>>, vector<8x128xf32>
    %c0_1 = arith.constant 0 : index
    %c0_2 = arith.constant 0 : index
    %1 = vector.load %arg2[%c0_1, %c0_2] : memref<8x128xf32, #tpu.memory_space<vmem>>, vector<8x128xf32>
    %c0_3 = arith.constant 0 : index
    %c0_4 = arith.constant 0 : index
    %2 = vector.load %arg3[%c0_3, %c0_4] : memref<128x384xf32, #tpu.memory_space<vmem>>, vector<128x384xf32>
    %cst = arith.constant dense<0.000000e+00> : vector<8x384xf32>
    %3 = tpu.matmul %1, %2, %cst {dimension_numbers = #tpu.dot_dimension_numbers<[1], [0], [0], [1], [0, 0, 1, 1], [], []>} : vector<8x128xf32>, vector<128x384xf32>, vector<8x384xf32> -> vector<8x384xf32>
    %4 = tpu.concatenate %0, %0, %0 in 1 : vector<8x128xf32>, vector<8x128xf32>, vector<8x128xf32> -> vector<8x384xf32>
    %5 = arith.mulf %3, %4 : vector<8x384xf32>
    %c0_5 = arith.constant 0 : index
    %c0_6 = arith.constant 0 : index
    %6 = vector.load %arg4[%c0_5, %c0_6] : memref<384x128xf32, #tpu.memory_space<vmem>>, vector<384x128xf32>
    %cst_7 = arith.constant dense<0.000000e+00> : vector<8x128xf32>
    %7 = tpu.matmul %5, %6, %cst_7 {dimension_numbers = #tpu.dot_dimension_numbers<[1], [0], [0], [1], [0, 0, 1, 1], [], []>} : vector<8x384xf32>, vector<384x128xf32>, vector<8x128xf32> -> vector<8x128xf32>
    %8 = tpu.iota {dimensions = array<i32: 1>} : vector<8x128xi32>
    %c3_i32 = arith.constant 3 : i32
    %9 = vector.broadcast %c3_i32 : i32 to vector<8x128xi32>
    %10 = arith.cmpi slt, %8, %9 : vector<8x128xi32>
    %cst_8 = arith.constant 0xFF800000 : f32
    %11 = vector.broadcast %cst_8 : f32 to vector<8x128xf32>
    %12 = arith.select %10, %7, %11 : vector<8x128xi1>, vector<8x128xf32>
    %cst_9 = arith.constant dense<0xFF800000> : vector<8xf32>
    %13 = vector.multi_reduction <maximumf>, %12, %cst_9 [1] : vector<8x128xf32> to vector<8xf32>
    %14 = vector.shape_cast %13 : vector<8xf32> to vector<8x1xf32>
    %15 = vector.broadcast %14 : vector<8x1xf32> to vector<8x128xf32>
    %16 = arith.subf %12, %15 : vector<8x128xf32>
    %17 = math.exp %16 : vector<8x128xf32>
    %cst_10 = arith.constant dense<0.000000e+00> : vector<8xf32>
    %18 = vector.multi_reduction <add>, %17, %cst_10 [1] : vector<8x128xf32> to vector<8xf32>
    %19 = vector.shape_cast %18 : vector<8xf32> to vector<8x1xf32>
    %20 = math.log %19 : vector<8x1xf32>
    %21 = arith.addf %14, %20 : vector<8x1xf32>
    %c0_11 = arith.constant 0 : index
    %c0_12 = arith.constant 0 : index
    %22 = vector.load %arg5[%c0_11, %c0_12] : memref<8x1xi32, #tpu.memory_space<vmem>>, vector<8x1xi32>
    %23 = vector.broadcast %22 : vector<8x1xi32> to vector<8x128xi32>
    %24 = arith.cmpi eq, %8, %23 : vector<8x128xi32>
    %cst_13 = arith.constant 0.000000e+00 : f32
    %25 = vector.broadcast %cst_13 : f32 to vector<8x128xf32>
    %26 = arith.select %24, %7, %25 : vector<8x128xi1>, vector<8x128xf32>
    %cst_14 = arith.constant dense<0.000000e+00> : vector<8xf32>
    %27 = vector.multi_reduction <add>, %26, %cst_14 [1] : vector<8x128xf32> to vector<8xf32>
    %28 = vector.shape_cast %27 : vector<8xf32> to vector<8x1xf32>
    %29 = arith.subf %21, %28 : vector<8x1xf32>
    %c3_i32_15 = arith.constant 3 : i32
    %30 = vector.broadcast %c3_i32_15 : i32 to vector<8x128xi32>
    %31 = arith.cmpi eq, %8, %30 : vector<8x128xi32>
    %cst_16 = arith.constant 0.000000e+00 : f32
    %32 = vector.shape_cast %29 : vector<8x1xf32> to vector<8x1xf32>
    %33 = vector.broadcast %32 : vector<8x1xf32> to vector<8x128xf32>
    %34 = vector.broadcast %cst_16 : f32 to vector<8x128xf32>
    %35 = arith.select %31, %33, %34 : vector<8x128xi1>, vector<8x128xf32>
    %36 = arith.addf %7, %35 : vector<8x128xf32>
    %c0_17 = arith.constant 0 : index
    %c0_18 = arith.constant 0 : index
    %37 = vector.load %arg6[%c0_17, %c0_18] : memref<8x128xf32, #tpu.memory_space<vmem>>, vector<8x128xf32>
    tpu.vector_store %arg6[%c0_17, %c0_18], %36 {strides = array<i32>} : memref<8x128xf32, #tpu.memory_space<vmem>>, vector<8x128xf32>,
    return
  }
  func.func @transform_0(%arg0: i32) -> (i32, i32) {
    %c0_i32 = arith.constant 0 : i32
    %c0_i32_0 = arith.constant 0 : i32
    return %arg0, %c0_i32 : i32, i32
  }
  func.func @transform_1(%arg0: i32) -> (i32, i32) {
    %c0_i32 = arith.constant 0 : i32
    %c0_i32_0 = arith.constant 0 : i32
    return %arg0, %c0_i32 : i32, i32
  }
  func.func @transform_2(%arg0: i32) -> (i32, i32) {
    %c0_i32 = arith.constant 0 : i32
    %c0_i32_0 = arith.constant 0 : i32
    %c0_i32_1 = arith.constant 0 : i32
    return %c0_i32, %c0_i32_0 : i32, i32
  }
  func.func @transform_3(%arg0: i32) -> (i32, i32) {
    %c0_i32 = arith.constant 0 : i32
    %c0_i32_0 = arith.constant 0 : i32
    %c0_i32_1 = arith.constant 0 : i32
    return %c0_i32, %c0_i32_0 : i32, i32
  }
  func.func @transform_4(%arg0: i32) -> (i32, i32) {
    %c0_i32 = arith.constant 0 : i32
    %c0_i32_0 = arith.constant 0 : i32
    return %arg0, %c0_i32 : i32, i32
  }
  func.func @transform_5(%arg0: i32) -> (i32, i32) {
    %c0_i32 = arith.constant 0 : i32
    %c0_i32_0 = arith.constant 0 : i32
    return %arg0, %c0_i32 : i32, i32
  }
}

module attributes {stable_mosaic.version = 11 : i64} {
  func.func @_bilinear_loss_kernel(%arg0: i32, %arg1: memref<8x128xf32, #tpu.memory_space<vmem>>, %arg2: memref<8x128xf32, #tpu.memory_space<vmem>>, %arg3: memref<128x384xf32, #tpu.memory_space<vmem>>, %arg4: memref<384x128xf32, #tpu.memory_space<vmem>>, %arg5: memref<8x1xi32, #tpu.memory_space<vmem>>, %arg6: memref<8x128xf32, #tpu.memory_space<vmem>>) attributes {dimension_semantics = [#tpu.dimension_semantics<parallel>], iteration_bounds = array<i64: 1>, scalar_prefetch = 0 : i64, scratch_operands = 0 : i64, tpu.core_type = #tpu.core_type<tc>, window_params = [{transform_indices = @transform_0, window_bounds = array<i64: 8, 128>}, {transform_indices = @transform_1, window_bounds = array<i64: 8, 128>}, {pipeline_mode = #tpu.pipeline_mode<synchronous>, transform_indices = @transform_2, window_bounds = array<i64: 128, 384>}, {pipeline_mode = #tpu.pipeline_mode<synchronous>, transform_indices = @transform_3, window_bounds = array<i64: 384, 128>}, {transform_indices = @transform_4, window_bounds = array<i64: 8, 1>}, {transform_indices = @transform_5, window_bounds = array<i64: 8, 128>}]} {
    %c0 = arith.constant 0 : index
    %c0_0 = arith.constant 0 : index
    %0 = vector.load %arg1[%c0, %c0_0] : memref<8x128xf32, #tpu.memory_space<vmem>>, vector<8x128xf32>
    %c0_1 = arith.constant 0 : index
    %c0_2 = arith.constant 0 : index
    %1 = vector.load %arg2[%c0_1, %c0_2] : memref<8x128xf32, #tpu.memory_space<vmem>>, vector<8x128xf32>
    %c0_3 = arith.constant 0 : index
    %c0_4 = arith.constant 0 : index
    %2 = vector.load %arg3[%c0_3, %c0_4] : memref<128x384xf32, #tpu.memory_space<vmem>>, vector<128x384xf32>
    %cst = arith.constant dense<0.000000e+00> : vector<8x384xf32>
    %3 = tpu.matmul %1, %2, %cst {dimension_numbers = #tpu.dot_dimension_numbers<[1], [0], [0], [1], [0, 0, 1, 1], [], []>} : vector<8x128xf32>, vector<128x384xf32>, vector<8x384xf32> -> vector<8x384xf32>
    %4 = tpu.concatenate %0, %0, %0 in 1 : vector<8x128xf32>, vector<8x128xf32>, vector<8x128xf32> -> vector<8x384xf32>
    %5 = arith.mulf %3, %4 : vector<8x384xf32>
    %c0_5 = arith.constant 0 : index
    %c0_6 = arith.constant 0 : index
    %6 = vector.load %arg4[%c0_5, %c0_6] : memref<384x128xf32, #tpu.memory_space<vmem>>, vector<384x128xf32>
    %cst_7 = arith.constant dense<0.000000e+00> : vector<8x128xf32>
    %7 = tpu.matmul %5, %6, %cst_7 {dimension_numbers = #tpu.dot_dimension_numbers<[1], [0], [0], [1], [0, 0, 1, 1], [], []>} : vector<8x384xf32>, vector<384x128xf32>, vector<8x128xf32> -> vector<8x128xf32>
    %8 = tpu.iota {dimensions = array<i32: 1>} : vector<8x128xi32>
    %c3_i32 = arith.constant 3 : i32
    %9 = vector.broadcast %c3_i32 : i32 to vector<8x128xi32>
    %10 = arith.cmpi slt, %8, %9 : vector<8x128xi32>
    %cst_8 = arith.constant 0xFF800000 : f32
    %11 = vector.broadcast %cst_8 : f32 to vector<8x128xf32>
    %12 = arith.select %10, %7, %11 : vector<8x128xi1>, vector<8x128xf32>
    %cst_9 = arith.constant dense<0xFF800000> : vector<8xf32>
    %13 = vector.multi_reduction <maximumf>, %12, %cst_9 [1] : vector<8x128xf32> to vector<8xf32>
    %14 = vector.shape_cast %13 : vector<8xf32> to vector<8x1xf32>
    %15 = vector.broadcast %14 : vector<8x1xf32> to vector<8x128xf32>
    %16 = arith.subf %12, %15 : vector<8x128xf32>
    %17 = math.exp %16 : vector<8x128xf32>
    %cst_10 = arith.constant dense<0.000000e+00> : vector<8xf32>
    %18 = vector.multi_reduction <add>, %17, %cst_10 [1] : vector<8x128xf32> to vector<8xf32>
    %19 = vector.shape_cast %18 : vector<8xf32> to vector<8x1xf32>
    %20 = math.log %19 : vector<8x1xf32>
    %21 = arith.addf %14, %20 : vector<8x1xf32>
    %c0_11 = arith.constant 0 : index
    %c0_12 = arith.constant 0 : index
    %22 = vector.load %arg5[%c0_11, %c0_12] : memref<8x1xi32, #tpu.memory_space<vmem>>, vector<8x1xi32>
    %23 = vector.broadcast %22 : vector<8x1xi32> to vector<8x128xi32>
    %24 = arith.cmpi eq, %8, %23 : vector<8x128xi32>
    %cst_13 = arith.constant 0.000000e+00 : f32
    %25 = vector.broadcast %cst_13 : f32 to vector<8x128xf32>
    %26 = arith.select %24, %7, %25 : vector<8x128xi1>, vector<8x128xf32>
    %cst_14 = arith.constant dense<0.000000e+00> : vector<8xf32>
    %27 = vector.multi_reduction <add>, %26, %cst_14 [1] : vector<8x128xf32> to vector<8xf32>
    %28 = vector.shape_cast %27 : vector<8xf32> to vector<8x1xf32>
    %29 = arith.subf %21, %28 : vector<8x1xf32>
    %c3_i32_15 = arith.constant 3 : i32
    %30 = vector.broadcast %c3_i32_15 : i32 to vector<8x128xi32>
    %31 = arith.cmpi eq, %8, %30 : vector<8x128xi32>
    %cst_16 = arith.constant 0.000000e+00 : f32
    %32 = vector.shape_cast %29 : vector<8x1xf32> to vector<8x1xf32>
    %33 = vector.broadcast %32 : vector<8x1xf32> to vector<8x128xf32>
    %34 = vector.broadcast %cst_16 : f32 to vector<8x128xf32>
    %35 = arith.select %31, %33, %34 : vector<8x128xi1>, vector<8x128xf32>
    %36 = arith.addf %7, %35 : vector<8x128xf32>
    %c0_17 = arith.constant 0 : index
    %c0_18 = arith.constant 0 : index
    %37 = vector.load %arg6[%c0_17, %c0_18] : memref<8x128xf32, #tpu.memory_space<vmem>>, vector<8x128xf32>
    tpu.vector_store %arg6[%c0_17, %c0_18], %36 {strides = array<i32>} : memref<8x128xf32, #tpu.memory_space<vmem>>, vector<8x128xf32>,
    return
  }
  func.func @transform_0(%arg0: i32) -> (i32, i32) {
    %c0_i32 = arith.constant 0 : i32
    %c0_i32_0 = arith.constant 0 : i32
    return %arg0, %c0_i32 : i32, i32
  }
  func.func @transform_1(%arg0: i32) -> (i32, i32) {
    %c0_i32 = arith.constant 0 : i32
    %c0_i32_0 = arith.constant 0 : i32
    return %arg0, %c0_i32 : i32, i32
  }
  func.func @transform_2(%arg0: i32) -> (i32, i32) {
    %c0_i32 = arith.constant 0 : i32
    %c0_i32_0 = arith.constant 0 : i32
    %c0_i32_1 = arith.constant 0 : i32
    return %c0_i32, %c0_i32_0 : i32, i32
  }
  func.func @transform_3(%arg0: i32) -> (i32, i32) {
    %c0_i32 = arith.constant 0 : i32
    %c0_i32_0 = arith.constant 0 : i32
    %c0_i32_1 = arith.constant 0 : i32
    return %c0_i32, %c0_i32_0 : i32, i32
  }
  func.func @transform_4(%arg0: i32) -> (i32, i32) {
    %c0_i32 = arith.constant 0 : i32
    %c0_i32_0 = arith.constant 0 : i32
    return %arg0, %c0_i32 : i32, i32
  }
  func.func @transform_5(%arg0: i32) -> (i32, i32) {
    %c0_i32 = arith.constant 0 : i32
    %c0_i32_0 = arith.constant 0 : i32
    return %arg0, %c0_i32 : i32, i32
  }
}

</mosaic_0001>

<bundles_post_ra>
// kernel: tpu_custom_call.1
= control target key start
LH: loop header
LB: loop body
LE: loop exit
PB: predicated region body
PF: predicated region fallthrough
CT: control target
= control target key end

     0   :  { %10 = vsyncpa [#allocation3], 0  ;;  %s964_s0 = inlined_call_operand.vmem [shape: f32[8,128], index: 0, kind: input, shape index: {}]   ;;  %s965_s1 = inlined_call_operand.hbm [shape: f32[8,128], index: 1, kind: input, shape index: {}]   ;;  %s966_s2 = inlined_call_operand.hbm [shape: f32[128,384], index: 2, kind: input, shape index: {}]   ;;  %s967_s3 = inlined_call_operand.hbm [shape: f32[384,128], index: 3, kind: input, shape index: {}]   ;;  %s968_s4 = inlined_call_operand.vmem [shape: s32[8,1], index: 4, kind: input, shape index: {}]   ;;  %s969_s5 = inlined_call_operand.hbm [shape: f32[8,128], index: 5, kind: output, shape index: {}]  }
   0x1   :  { %11 = vsyncpa [#allocation6], 0 }
   0x2   :  { %12 = vsyncpa [#allocation4], 0  ;;  %s847_s18 = smov [#allocation5]   ;;  %s753_s22 = scalar_lea.hbm %s966_s2, 6144 }
   0x3   :  { %s30_s19 = sshll.u32 %s847_s18, 4  ;;  %p754_p0 = scmp.ne.s32.totalorder %s966_s2, %s753_s22  ;;  %s31_s19 = int_to_ptr.vmem [resolvable:$true] %s30_s19 }
   0x4   :  { %p757_p1 = scmp.lt.u32.totalorder %s753_s22, %s966_s2 }
   0x6   :  { %p759_p2 = pnand %p757_p1, %p754_p0 }
   0x8   :  { %762 = shalt.err (!%p759_p2)
}
   0x9   :  { %s763_s27 = scalar_lea.vmem %s31_s19, 6144  ;;  %p768_p4 = scmp.lt.s32.totalorder %s31_s19, %s31_s19 }
   0xa   :  { %p764_p3 = scmp.ne.s32.totalorder %s31_s19, %s763_s27  ;;  %p769_p5 = scmp.lt.s32.totalorder %s763_s27, %s763_s27 }
   0xc   :  { %p770_p6 = por %p769_p5, %p768_p4 }
   0xe   :  { %p771_p7 = pnand %p770_p6, %p764_p3 }
  0x10   :  { %774 = shalt.err (!%p771_p7)
}
  0x11   :  { %s848_s28 = smov 384   ;;  %s849_s29 = smov 24  }
  0x12   :  { %36 = dma.hbm_to_vmem [thread:$0]  %s966_s2, 6144, %s31_s19, [#allocation6], %s848_s28, %s848_s28, %s849_s29  }
  0x13   :  { %s850_s7 = smov [#allocation2]   ;;  %s851_s9 = smov [#allocation7]  }
  0x14   :  { %s21_s8 = sshll.u32 %s850_s7, 4  ;;  %s42_s10 = sshll.u32 %s851_s9, 4  ;;  %s22_s8 = int_to_ptr.vmem [resolvable:$true] %s21_s8  ;;  %s43_s10 = int_to_ptr.vmem [resolvable:$true] %s42_s10 }
  0x15   :  { %s775_s13 = scalar_lea.hbm %s965_s1, 128 }
  0x16   :  { %p776_p8 = scmp.ne.s32.totalorder %s965_s1, %s775_s13  ;;  %p779_p9 = scmp.lt.u32.totalorder %s775_s13, %s965_s1 }
  0x18   :  { %p781_p10 = pnand %p779_p9, %p776_p8 }
  0x1a   :  { %784 = shalt.err (!%p781_p10)
}
  0x1b   :  { %s785_s2 = scalar_lea.vmem %s22_s8, 128  ;;  %p790_p12 = scmp.lt.s32.totalorder %s22_s8, %s22_s8 }
  0x1c   :  { %p786_p11 = scmp.ne.s32.totalorder %s22_s8, %s785_s2  ;;  %p791_p13 = scmp.lt.s32.totalorder %s785_s2, %s785_s2 }
  0x1e   :  { %p792_p0 = por %p791_p13, %p790_p12 }
  0x20   :  { %p793_p1 = pnand %p792_p0, %p786_p11 }
  0x22   :  { %796 = shalt.err (!%p793_p1)
}
  0x23   :  { %24 = dma.hbm_to_vmem [thread:$0]  %s965_s1, 128, %s22_s8, [#allocation3]  }
  0x24   :  { %s797_s22 = scalar_lea.hbm %s967_s3, 6144 }
  0x25   :  { %p798_p2 = scmp.ne.s32.totalorder %s967_s3, %s797_s22  ;;  %p801_p3 = scmp.lt.u32.totalorder %s797_s22, %s967_s3 }
  0x27   :  { %p803_p4 = pnand %p801_p3, %p798_p2 }
  0x29   :  { %806 = shalt.err (!%p803_p4)
}
  0x2a   :  { %s807_s27 = scalar_lea.vmem %s43_s10, 6144  ;;  %p812_p6 = scmp.lt.s32.totalorder %s43_s10, %s43_s10 }
  0x2b   :  { %p808_p5 = scmp.ne.s32.totalorder %s43_s10, %s807_s27  ;;  %p813_p7 = scmp.lt.s32.totalorder %s807_s27, %s807_s27 }
  0x2d   :  { %p814_p8 = por %p813_p7, %p812_p6 }
  0x2f   :  { %p815_p9 = pnand %p814_p8, %p808_p5 }
  0x31   :  { %818 = shalt.err (!%p815_p9)
}
  0x32   :  { %s852_s1 = smov 128   ;;  %s853_s28 = smov 8  }
  0x33   :  { %48 = dma.hbm_to_vmem [thread:$0]  %s967_s3, 6144, %s43_s10, [#allocation6], %s852_s1, %s852_s1, %s853_s28  }
  0x34   :  { %841 = dma.done.wait [#allocation3], 128  }
  0x35   :  { %842 = vsyncadd [#allocation3], 4294967168 }
  0x36   :  { %843 = dma.done.wait [#allocation6], 12288  }
  0x37   :  { %844 = vsyncadd [#allocation6], 4294955008  ;;  %v854_v0 = vmov 0.0|0.0   ;;  %v855_v1 = vmov 0.0   ;;  %vm856_vm0 = vmmov 0   ;;  %v63_v2 = vld [vmem:[#allocation5 + $0x8] sm:$0xff] }
  0x38   :  { %656 = vmatprep.subr.bf16.mxu1 %v854_v0  ;;  %174 = vmatprep.mubr.f32.mxu0 %v855_v1  ;;  %v66_v3 = vld [vmem:[#allocation5 + $0x20] sm:$0xff]  ;;  %v65_v6 = vld [vmem:[#allocation5 + $0x18] sm:$0xff]  ;;  %v72_v8 = vld [vmem:[#allocation5 + $0x50] sm:$0xff] }
  0x39   :  { %586 = vmatprep.mubr.msk.f32.mxu1 %vm856_vm0, %v855_v1  ;;  %v62_v4 = vld [vmem:[#allocation5] sm:$0xff]  ;;  %v624_v5 = vpack.c.bf16 %v66_v3, %v63_v2  ;;  %v69_v7 = vld [vmem:[#allocation5 + $0x38] sm:$0xff]  ;;  %v68_v11 = vld [vmem:[#allocation5 + $0x30] sm:$0xff] }
  0x3a   :  { %v626_v9 = vpack.c.bf16 %v65_v6, %v62_v4  ;;  %v628_v10 = vpack.c.bf16 %v72_v8, %v69_v7  ;;  %v71_v12 = vld [vmem:[#allocation5 + $0x48] sm:$0xff]  ;;  %v64_v13 = vld [vmem:[#allocation5 + $0x10] sm:$0xff]  ;;  %v78_v16 = vld [vmem:[#allocation5 + $0x80] sm:$0xff] }
  0x3b   :  { %625 = vmatprep.subr.bf16.mxu0 %v624_v5  ;;  %v67_v14 = vld [vmem:[#allocation5 + $0x28] sm:$0xff]  ;;  %v630_v17 = vpack.c.bf16 %v71_v12, %v68_v11  ;;  %v70_v19 = vld [vmem:[#allocation5 + $0x40] sm:$0xff]  ;;  %v77_v22 = vld [vmem:[#allocation5 + $0x78] sm:$0xff] }
  0x3c   :  { %v75_v15 = vld [vmem:[#allocation5 + $0x68] sm:$0xff]  ;;  %627 = vmatpush1.bf16.msra.mxu0 %v626_v9  ;;  %v657_v18 = vpack.c.bf16 %v67_v14, %v64_v13  ;;  %v74_v21 = vld [vmem:[#allocation5 + $0x60] sm:$0xff]  ;;  %v73_v23 = vld [vmem:[#allocation5 + $0x58] sm:$0xff] }
  0x3d   :  { %629 = vmatprep.subr.bf16.mxu0 %v628_v10  ;;  %v632_v20 = vpack.c.bf16 %v78_v16, %v75_v15  ;;  %v660_v24 = vpack.c.bf16 %v73_v23, %v70_v19  ;;  %v81_v25 = vld [vmem:[#allocation5 + $0x98] sm:$0xff]  ;;  %v84_v26 = vld [vmem:[#allocation5 + $0xb0] sm:$0xff]  ;;  %v79_v28 = vld [vmem:[#allocation5 + $0x88] sm:$0xff]  ;;  %v634_v29 = vpack.c.bf16 %v77_v22, %v74_v21 }
  0x3e   :  { %658 = vmatpush3.bf16.msra.mxu1 %v657_v18  ;;  %v76_v27 = vld [vmem:[#allocation5 + $0x70] sm:$0xff]  ;;  %v636_v30 = vpack.c.bf16 %v84_v26, %v81_v25  ;;  %v83_v32 = vld [vmem:[#allocation5 + $0xa8] sm:$0xff]  ;;  %v90_v35 = vld [vmem:[#allocation5 + $0xe0] sm:$0xff] }
  0x3f   :  { %659 = vmatprep.subr.bf16.mxu1 %v854_v0  ;;  %v80_v31 = vld [vmem:[#allocation5 + $0x90] sm:$0xff]  ;;  %v663_v33 = vpack.c.bf16 %v79_v28, %v76_v27  ;;  %v87_v34 = vld [vmem:[#allocation5 + $0xc8] sm:$0xff]  ;;  %v82_v36 = vld [vmem:[#allocation5 + $0xa0] sm:$0xff] }
  0x40   :  { %631 = vmatpush1.bf16.msra.mxu0 %v630_v17  ;;  %v85_v37 = vld [vmem:[#allocation5 + $0xb8] sm:$0xff]  ;;  %v638_v38 = vpack.c.bf16 %v83_v32, %v80_v31  ;;  %v640_v39 = vpack.c.bf16 %v90_v35, %v87_v34  ;;  %v86_v40 = vld [vmem:[#allocation5 + $0xc0] sm:$0xff]  ;;  %v96_v44 = vld [vmem:[#allocation5 + $0x110] sm:$0xff] }
  0x41   :  { %633 = vmatprep.subr.bf16.mxu0 %v632_v20  ;;  %v89_v41 = vld [vmem:[#allocation5 + $0xd8] sm:$0xff]  ;;  %v666_v42 = vpack.c.bf16 %v85_v37, %v82_v36  ;;  %v88_v45 = vld [vmem:[#allocation5 + $0xd0] sm:$0xff]  ;;  %v91_v46 = vld [vmem:[#allocation5 + $0xe8] sm:$0xff] }
  0x42   :  { %661 = vmatpush3.bf16.msra.mxu1 %v660_v24  ;;  %v93_v43 = vld [vmem:[#allocation5 + $0xf8] sm:$0xff]  ;;  %v642_v47 = vpack.c.bf16 %v89_v41, %v86_v40  ;;  %v92_v49 = vld [vmem:[#allocation5 + $0xf0] sm:$0xff]  ;;  %v95_v50 = vld [vmem:[#allocation5 + $0x108] sm:$0xff]  ;;  %v669_v51 = vpack.c.bf16 %v91_v46, %v88_v45 }
  0x43   :  { %662 = vmatprep.subr.bf16.mxu1 %v854_v0  ;;  %v644_v48 = vpack.c.bf16 %v96_v44, %v93_v43  ;;  %v99_v52 = vld [vmem:[#allocation5 + $0x128] sm:$0xff]  ;;  %v102_v53 = vld [vmem:[#allocation5 + $0x140] sm:$0xff]  ;;  %v97_v55 = vld [vmem:[#allocation5 + $0x118] sm:$0xff]  ;;  %v646_v56 = vpack.c.bf16 %v95_v50, %v92_v49 }
  0x44   :  { %635 = vmatpush1.bf16.msra.mxu0 %v634_v29  ;;  %v94_v54 = vld [vmem:[#allocation5 + $0x100] sm:$0xff]  ;;  %v648_v57 = vpack.c.bf16 %v102_v53, %v99_v52  ;;  %v101_v59 = vld [vmem:[#allocation5 + $0x138] sm:$0xff]  ;;  %v108_v62 = vld [vmem:[#allocation5 + $0x170] sm:$0xff] }
  0x45   :  { %637 = vmatprep.subr.bf16.mxu0 %v636_v30  ;;  %v98_v58 = vld [vmem:[#allocation5 + $0x120] sm:$0xff]  ;;  %v672_v60 = vpack.c.bf16 %v97_v55, %v94_v54  ;;  %v105_v61 = vld [vmem:[#allocation5 + $0x158] sm:$0xff]  ;;  %v100_v63 = vld [vmem:[#allocation5 + $0x130] sm:$0xff] }
  0x46   :  { %664 = vmatpush3.bf16.msra.mxu1 %v663_v33  ;;  %v103_v2 = vld [vmem:[#allocation5 + $0x148] sm:$0xff]  ;;  %v650_v3 = vpack.c.bf16 %v101_v59, %v98_v58  ;;  %v652_v4 = vpack.c.bf16 %v108_v62, %v105_v61  ;;  %v104_v5 = vld [vmem:[#allocation5 + $0x150] sm:$0xff]  ;;  %v270_v8 = vld [vmem:[#allocation7 + $0x80] sm:$0xff] }
  0x47   :  { %665 = vmatprep.subr.bf16.mxu1 %v854_v0  ;;  %v107_v6 = vld [vmem:[#allocation5 + $0x168] sm:$0xff]  ;;  %v675_v7 = vpack.c.bf16 %v103_v2, %v100_v63  ;;  %v106_v10 = vld [vmem:[#allocation5 + $0x160] sm:$0xff]  ;;  %v109_v11 = vld [vmem:[#allocation5 + $0x178] sm:$0xff] }
  0x48   :  { %639 = vmatpush1.bf16.msra.mxu0 %v638_v38  ;;  %v271_v9 = vld [vmem:[#allocation7 + $0x88] sm:$0xff]  ;;  %v654_v12 = vpack.c.bf16 %v107_v6, %v104_v5  ;;  %v254_v14 = vld [vmem:[#allocation7] sm:$0xff]  ;;  %v678_v16 = vpack.c.bf16 %v109_v11, %v106_v10  ;;  %v272_v17 = vld [vmem:[#allocation7 + $0x90] sm:$0xff] }
  0x49   :  { %641 = vmatprep.subr.bf16.mxu0 %v640_v39  ;;  %v680_v13 = vpack.c.bf16 %v271_v9, %v270_v8  ;;  %v255_v15 = vld [vmem:[#allocation7 + $0x8] sm:$0xff]  ;;  %v273_v18 = vld [vmem:[#allocation7 + $0x98] sm:$0xff]  ;;  %v286_v19 = vld [vmem:[#allocation7 + $0x100] sm:$0xff] }
  0x4a   :  { %667 = vmatpush3.bf16.msra.mxu1 %v666_v42  ;;  %v287_v20 = vld [vmem:[#allocation7 + $0x108] sm:$0xff]  ;;  %v61_v21 = vld [vmem:[#allocation2] sm:$0xff]  ;;  %v682_v22 = vpack.c.bf16 %v255_v15, %v254_v14  ;;  %v684_v23 = vpack.c.bf16 %v273_v18, %v272_v17  ;;  %v256_v24 = vld [vmem:[#allocation7 + $0x10] sm:$0xff] }
  0x4b   :  { %668 = vmatprep.subr.bf16.mxu1 %v854_v0  ;;  %v257_v25 = vld [vmem:[#allocation7 + $0x18] sm:$0xff]  ;;  %v713_v26 = vpack.c.bf16 %v287_v20, %v286_v19  ;;  %v274_v27 = vld [vmem:[#allocation7 + $0xa0] sm:$0xff]  ;;  %v275_v28 = vld [vmem:[#allocation7 + $0xa8] sm:$0xff] }
  0x4c   :  { %643 = vmatpush1.bf16.msra.mxu0 %v642_v47  ;;  %v288_v29 = vld [vmem:[#allocation7 + $0x110] sm:$0xff]  ;;  %v289_v30 = vld [vmem:[#allocation7 + $0x118] sm:$0xff]  ;;  %v686_v31 = vpack.c.bf16 %v257_v25, %v256_v24  ;;  %v688_v32 = vpack.c.bf16 %v275_v28, %v274_v27  ;;  %v258_v33 = vld [vmem:[#allocation7 + $0x20] sm:$0xff] }
  0x4d   :  { %645 = vmatprep.subr.bf16.mxu0 %v644_v48  ;;  %v259_v34 = vld [vmem:[#allocation7 + $0x28] sm:$0xff]  ;;  %v716_v35 = vpack.c.bf16 %v289_v30, %v288_v29  ;;  %v276_v36 = vld [vmem:[#allocation7 + $0xb0] sm:$0xff]  ;;  %v277_v37 = vld [vmem:[#allocation7 + $0xb8] sm:$0xff]  ;;  %v442_v30 = vlaneseq }
  0x4e   :  { %670 = vmatpush3.bf16.msra.mxu1 %v669_v51  ;;  %v290_v38 = vld [vmem:[#allocation7 + $0x120] sm:$0xff]  ;;  %v291_v39 = vld [vmem:[#allocation7 + $0x128] sm:$0xff]  ;;  %v690_v40 = vpack.c.bf16 %v259_v34, %v258_v33  ;;  %v692_v41 = vpack.c.bf16 %v277_v37, %v276_v36  ;;  %v260_v42 = vld [vmem:[#allocation7 + $0x30] sm:$0xff] }
  0x4f   :  { %671 = vmatprep.subr.bf16.mxu1 %v854_v0  ;;  %v261_v43 = vld [vmem:[#allocation7 + $0x38] sm:$0xff]  ;;  %v719_v44 = vpack.c.bf16 %v291_v39, %v290_v38  ;;  %v278_v45 = vld [vmem:[#allocation7 + $0xc0] sm:$0xff]  ;;  %v279_v46 = vld [vmem:[#allocation7 + $0xc8] sm:$0xff] }
  0x50   :  { %647 = vmatpush1.bf16.msra.mxu0 %v646_v56  ;;  %v292_v47 = vld [vmem:[#allocation7 + $0x130] sm:$0xff]  ;;  %v293_v48 = vld [vmem:[#allocation7 + $0x138] sm:$0xff]  ;;  %v696_v49 = vpack.c.bf16 %v279_v46, %v278_v45  ;;  %v262_v50 = vld [vmem:[#allocation7 + $0x40] sm:$0xff] }
  0x51   :  { %649 = vmatprep.subr.bf16.mxu0 %v648_v57  ;;  %v263_v51 = vld [vmem:[#allocation7 + $0x48] sm:$0xff]  ;;  %v722_v52 = vpack.c.bf16 %v293_v48, %v292_v47  ;;  %v280_v53 = vld [vmem:[#allocation7 + $0xd0] sm:$0xff]  ;;  %v281_v54 = vld [vmem:[#allocation7 + $0xd8] sm:$0xff] }
  0x52   :  { %673 = vmatpush3.bf16.msra.mxu1 %v672_v60  ;;  %v294_v55 = vld [vmem:[#allocation7 + $0x140] sm:$0xff]  ;;  %v295_v56 = vld [vmem:[#allocation7 + $0x148] sm:$0xff]  ;;  %v698_v57 = vpack.c.bf16 %v263_v51, %v262_v50  ;;  %v700_v58 = vpack.c.bf16 %v281_v54, %v280_v53  ;;  %v264_v59 = vld [vmem:[#allocation7 + $0x50] sm:$0xff] }
  0x53   :  { %674 = vmatprep.subr.bf16.mxu1 %v854_v0  ;;  %v265_v60 = vld [vmem:[#allocation7 + $0x58] sm:$0xff]  ;;  %v725_v61 = vpack.c.bf16 %v295_v56, %v294_v55  ;;  %v282_v62 = vld [vmem:[#allocation7 + $0xe0] sm:$0xff]  ;;  %v283_v63 = vld [vmem:[#allocation7 + $0xe8] sm:$0xff] }
  0x54   :  { %651 = vmatpush1.bf16.msra.mxu0 %v650_v3  ;;  %v296_v2 = vld [vmem:[#allocation7 + $0x150] sm:$0xff]  ;;  %v297_v3 = vld [vmem:[#allocation7 + $0x158] sm:$0xff]  ;;  %v704_v5 = vpack.c.bf16 %v283_v63, %v282_v62  ;;  %v266_v6 = vld [vmem:[#allocation7 + $0x60] sm:$0xff] }
  0x55   :  { %653 = vmatprep.subr.bf16.mxu0 %v652_v4  ;;  %v702_v4 = vpack.c.bf16 %v265_v60, %v264_v59  ;;  %v728_v8 = vpack.c.bf16 %v297_v3, %v296_v2  ;;  %v298_v10 = vld [vmem:[#allocation7 + $0x160] sm:$0xff]  ;;  %v299_v11 = vld [vmem:[#allocation7 + $0x168] sm:$0xff]  ;;  %v285_v14 = vld [vmem:[#allocation7 + $0xf8] sm:$0xff] }
  0x56   :  { %676 = vmatpush3.bf16.msra.mxu1 %v675_v7  ;;  %v267_v7 = vld [vmem:[#allocation7 + $0x68] sm:$0xff]  ;;  %v269_v17 = vld [vmem:[#allocation7 + $0x78] sm:$0xff]  ;;  %v300_v19 = vld [vmem:[#allocation7 + $0x170] sm:$0xff] }
  0x57   :  { %677 = vmatprep.subr.bf16.mxu1 %v854_v0  ;;  %v706_v9 = vpack.c.bf16 %v267_v7, %v266_v6  ;;  %v301_v20 = vld [vmem:[#allocation7 + $0x178] sm:$0xff] }
  0x58   :  { %655 = vmatpush1.bf16.msra.mxu0 %v654_v12  ;;  %v731_v12 = vpack.c.bf16 %v299_v11, %v298_v10  ;;  %v456_v39 = vld [vmem:[%s968_s4] sm:$0xff]  ;;  %s858_s4 = smov [#allocation8]  }
  0x59   :  { %681 = vmatprep.subr.bf16.mxu0 %v680_v13  ;;  %v284_v13 = vld [vmem:[#allocation7 + $0xf0] sm:$0xff]  ;;  %s475_s8 = sshll.u32 %s858_s4, 4  ;;  %s476_s8 = int_to_ptr.vmem [resolvable:$true] %s475_s8 }
  0x5a   :  { %679 = vmatpush3.bf16.msra.mxu1 %v678_v16  ;;  %v708_v15 = vpack.c.bf16 %v285_v14, %v284_v13  ;;  %v268_v16 = vld [vmem:[#allocation7 + $0x70] sm:$0xff]  ;;  %s819_s9 = scalar_lea.vmem %s476_s8, 128  ;;  %p824_p11 = scmp.lt.s32.totalorder %s476_s8, %s476_s8 }
  0x5b   :  { %175 = vmatmul.mubr.f32.vlgmr.msra.gmra.mrb[0].mxu0 %v61_v21  ;;  %712 = vmatprep.subr.bf16.mxu1 %v854_v0  ;;  %v710_v18 = vpack.c.bf16 %v269_v17, %v268_v16  ;;  %p820_p10 = scmp.ne.s32.totalorder %s476_s8, %s819_s9  ;;  %p825_p12 = scmp.lt.s32.totalorder %s819_s9, %s819_s9 }
  0x5c   :  { %683 = vmatpush3.bf16.msra.mxu0 %v682_v22  ;;  %v60_v22 = vld [vmem:[%s964_s0] sm:$0xff] }
  0x5d   :  { %587 = vmatmul.mubr.f32.vlgmr.msra.gmra.mrb[0].mxu1 %v61_v21  ;;  %685 = vmatprep.subr.bf16.mxu0 %v684_v23  ;;  %v734_v21 = vpack.c.bf16 %v301_v20, %v300_v19  ;;  %p826_p13 = por %p825_p12, %p824_p11 }
  0x5e   :  { %714 = vmatpush3.bf16.msra.mxu1 %v713_v26  ;;  %621 = vmatprep.mubr.msk.f32.mxu1 %vm856_vm0, %v855_v1  ;;  %v694_v1 = vpack.c.bf16 %v261_v43, %v260_v42 }
  0x5f   :  { %715 = vmatprep.subr.bf16.mxu1 %v854_v0  ;;  %p827_p0 = pnand %p826_p13, %p820_p10 }
  0x60   :  { %687 = vmatpush3.bf16.msra.mxu0 %v686_v31  ;;  %v443_v31 = vand.u32 127, %v442_v30 }
  0x61   :  { %689 = vmatprep.subr.bf16.mxu0 %v688_v32 }
  0x62   :  { %717 = vmatpush3.bf16.msra.mxu1 %v716_v35  ;;  %vm444_vm1 = vcmp.lt.s32.totalorder %v443_v31, 3  ;;  %vm465_vm3 = vcmp.eq.s32.totalorder %v443_v31, 3 }
  0x63   :  { %718 = vmatprep.subr.bf16.mxu1 %v854_v0 }
  0x64   :  { %691 = vmatpush3.bf16.msra.mxu0 %v690_v40 }
  0x65   :  { %693 = vmatprep.subr.bf16.mxu0 %v692_v41 }
  0x66   :  { %720 = vmatpush3.bf16.msra.mxu1 %v719_v44 }
  0x67   :  { %721 = vmatprep.subr.bf16.mxu1 %v854_v0 }
  0x68   :  { %695 = vmatpush3.bf16.msra.mxu0 %v694_v1 }
  0x69   :  { %697 = vmatprep.subr.bf16.mxu0 %v696_v49 }
  0x6a   :  { %723 = vmatpush3.bf16.msra.mxu1 %v722_v52 }
  0x6b   :  { %724 = vmatprep.subr.bf16.mxu1 %v854_v0 }
  0x6c   :  { %699 = vmatpush3.bf16.msra.mxu0 %v698_v57 }
  0x6d   :  { %701 = vmatprep.subr.bf16.mxu0 %v700_v58 }
  0x6e   :  { %726 = vmatpush3.bf16.msra.mxu1 %v725_v61 }
  0x6f   :  { %727 = vmatprep.subr.bf16.mxu1 %v854_v0 }
  0x70   :  { %703 = vmatpush3.bf16.msra.mxu0 %v702_v4 }
  0x71   :  { %705 = vmatprep.subr.bf16.mxu0 %v704_v5 }
  0x72   :  { %729 = vmatpush3.bf16.msra.mxu1 %v728_v8 }
  0x73   :  { %730 = vmatprep.subr.bf16.mxu1 %v854_v0 }
  0x74   :  { %707 = vmatpush3.bf16.msra.mxu0 %v706_v9 }
  0x75   :  { %709 = vmatprep.subr.bf16.mxu0 %v708_v15 }
  0x76   :  { %732 = vmatpush3.bf16.msra.mxu1 %v731_v12 }
  0x77   :  { %733 = vmatprep.subr.bf16.mxu1 %v854_v0  ;;  %v857_v0 = vmov 0  }
  0x78   :  { %711 = vmatpush3.bf16.msra.mxu0 %v710_v18  ;;  %748 = vset.pattern.permute.xlu0 %v857_v0 }
  0x7a   :  { %735 = vmatpush3.bf16.msra.mxu1 %v734_v21 }
 0x12e   :  { %v176_v23 = vpop.f32.mrb[0].mxu0 }
 0x12f   :  { %v178_v24 = vpop.f32.mrb[1].mxu0  ;;  %v251_v27 = vmul.f32 %v176_v23, %v60_v22 }
 0x130   :  { %v252_v25 = vmul.f32 %v178_v24, %v60_v22  ;;  %v247_v26 = vpop.f32.mrb[0].mxu1 }
 0x131   :  { %v253_v28 = vmul.f32 %v247_v26, %v60_v22  ;;  %v588_v29 = vpop.f32.mrb[1].mxu1 }
 0x132   :  { %366 = vmatprep.mubr.f32.mxu0 %v252_v25 }
 0x133   :  { %367 = vmatmul.mubr.f32.vlgmr.msra.gmra.mrb[2].mxu0 %v251_v27  ;;  %622 = vmatmul.mubr.f32.vlgmr.msra.gmra.mrb[2].mxu1 %v253_v28 }
 0x206   :  { %v534_v32 = vpop.f32.mrb[2].mxu0  ;;  %v438_v33 = vpop.f32.mrb[2].mxu1 }
 0x207   :  { %v535_v34 = vpop.f32.mrb[3].mxu0  ;;  %v623_v35 = vpop.f32.mrb[3].mxu1 }
 0x208   :  { %v536_v36 = vadd.f32 %v535_v34, %v534_v32 }
 0x20a   :  { %v439_v37 = vadd.f32 %v536_v36, %v438_v33 }
 0x20c   :  { %v445_v38 = vsel %vm444_vm1, %v439_v37, -inf }
 0x20d   :  { %446 = vmax.xlane.f32.xlu0 %v445_v38 }
 0x223   :  { %458 = vperm.xlu0 %748, %v456_v39  }
 0x29a   :  { %v447_v40 = vpop.xlane.xlu0 %446 }
 0x29b   :  { %v448_v41 = vsub.f32 %v445_v38, %v447_v40 }
 0x29d   :  { %v449_v42 = vmul.f32 1.442695, %v448_v41 }
 0x29f   :  { %749 = vpow2.f32 %v449_v42 }
 0x2a2   :  { %v459_v43 = vpop.permute.xlu0 %458 }
 0x2a3   :  { %vm460_vm2 = vcmp.eq.s32.totalorder %v443_v31, %v459_v43 }
 0x2a4   :  { %v461_v45 = vsel %vm460_vm2, %v439_v37, 0.0 }
 0x2a9   :  { %v750_v44 = vpop.eup %749 }
 0x2aa   :  { %451 = vadd.xlane.f32.xlu1 %v750_v44 }
 0x2ae   :  { %462 = vadd.xlane.f32.xlu1 %v461_v45 }
 0x337   :  { %v452_v46 = vpop.xlane.xlu1 %451 }
 0x338   :  { %751 = vlog2.f32 %v452_v46 }
 0x33b   :  { %v463_v49 = vpop.xlane.xlu1 %462 }
 0x342   :  { %v752_v47 = vpop.eup %751 }
 0x343   :  { %v454_v48 = vmul.f32 0.6931472, %v752_v47 }
 0x345   :  { %v455_v1 = vadd.f32 %v454_v48, %v447_v40 }
 0x347   :  { %v464_v50 = vsub.f32 %v455_v1, %v463_v49 }
 0x349   :  { %v466_v51 = vsel %vm465_vm3, %v464_v50, 0.0 }
 0x34a   :  { %v467_v52 = vadd.f32 %v466_v51, %v439_v37 }
 0x34c   :  { %468 = vst [vmem:[#allocation8] sm:$0xff] %v467_v52 }
 0x34d   :  { %830 = shalt.err (!%p827_p0)
}
 0x34e   :  { %s831_s12 = scalar_lea.hbm %s969_s5, 128 }
 0x34f   :  { %p832_p1 = scmp.ne.s32.totalorder %s969_s5, %s831_s12  ;;  %p835_p2 = scmp.lt.u32.totalorder %s831_s12, %s969_s5 }
 0x351   :  { %p837_p3 = pnand %p835_p2, %p832_p1 }
 0x353   :  { %840 = shalt.err (!%p837_p3)
}
 0x354   :  { %478 = dma.vmem_to_hbm [thread:$0]  %s476_s8, 128, %s969_s5, [#allocation4]  }
 0x355   :  { %845 = dma.done.wait [#allocation4], 128  }
 0x356   :  { %846 = vsyncadd [#allocation4], 4294967168 }
 0x357   :  { %482 = vsyncpa [#allocation3], 1 }
 0x358   :  { %483 = vsyncpa [#allocation6], 1 }
 0x359   :  { %484 = vsyncpa [#allocation4], 1 }

// kernel: tpu_custom_call.1
= control target key start
LH: loop header
LB: loop body
LE: loop exit
PB: predicated region body
PF: predicated region fallthrough
CT: control target
= control target key end

     0   :  { %10 = vsyncpa [#allocation3], 0  ;;  %s964_s0 = inlined_call_operand.vmem [shape: f32[8,128], index: 0, kind: input, shape index: {}]   ;;  %s965_s1 = inlined_call_operand.hbm [shape: f32[8,128], index: 1, kind: input, shape index: {}]   ;;  %s966_s2 = inlined_call_operand.hbm [shape: f32[128,384], index: 2, kind: input, shape index: {}]   ;;  %s967_s3 = inlined_call_operand.hbm [shape: f32[384,128], index: 3, kind: input, shape index: {}]   ;;  %s968_s4 = inlined_call_operand.vmem [shape: s32[8,1], index: 4, kind: input, shape index: {}]   ;;  %s969_s5 = inlined_call_operand.hbm [shape: f32[8,128], index: 5, kind: output, shape index: {}]  }
   0x1   :  { %11 = vsyncpa [#allocation6], 0 }
   0x2   :  { %12 = vsyncpa [#allocation4], 0  ;;  %s847_s18 = smov [#allocation5]   ;;  %s753_s22 = scalar_lea.hbm %s966_s2, 6144 }
   0x3   :  { %s30_s19 = sshll.u32 %s847_s18, 4  ;;  %p754_p0 = scmp.ne.s32.totalorder %s966_s2, %s753_s22  ;;  %s31_s19 = int_to_ptr.vmem [resolvable:$true] %s30_s19 }
   0x4   :  { %p757_p1 = scmp.lt.u32.totalorder %s753_s22, %s966_s2 }
   0x6   :  { %p759_p2 = pnand %p757_p1, %p754_p0 }
   0x8   :  { %762 = shalt.err (!%p759_p2)
}
   0x9   :  { %s763_s27 = scalar_lea.vmem %s31_s19, 6144  ;;  %p768_p4 = scmp.lt.s32.totalorder %s31_s19, %s31_s19 }
   0xa   :  { %p764_p3 = scmp.ne.s32.totalorder %s31_s19, %s763_s27  ;;  %p769_p5 = scmp.lt.s32.totalorder %s763_s27, %s763_s27 }
   0xc   :  { %p770_p6 = por %p769_p5, %p768_p4 }
   0xe   :  { %p771_p7 = pnand %p770_p6, %p764_p3 }
  0x10   :  { %774 = shalt.err (!%p771_p7)
}
  0x11   :  { %s848_s28 = smov 384   ;;  %s849_s29 = smov 24  }
  0x12   :  { %36 = dma.hbm_to_vmem [thread:$0]  %s966_s2, 6144, %s31_s19, [#allocation6], %s848_s28, %s848_s28, %s849_s29  }
  0x13   :  { %s850_s7 = smov [#allocation2]   ;;  %s851_s9 = smov [#allocation7]  }
  0x14   :  { %s21_s8 = sshll.u32 %s850_s7, 4  ;;  %s42_s10 = sshll.u32 %s851_s9, 4  ;;  %s22_s8 = int_to_ptr.vmem [resolvable:$true] %s21_s8  ;;  %s43_s10 = int_to_ptr.vmem [resolvable:$true] %s42_s10 }
  0x15   :  { %s775_s13 = scalar_lea.hbm %s965_s1, 128 }
  0x16   :  { %p776_p8 = scmp.ne.s32.totalorder %s965_s1, %s775_s13  ;;  %p779_p9 = scmp.lt.u32.totalorder %s775_s13, %s965_s1 }
  0x18   :  { %p781_p10 = pnand %p779_p9, %p776_p8 }
  0x1a   :  { %784 = shalt.err (!%p781_p10)
}
  0x1b   :  { %s785_s2 = scalar_lea.vmem %s22_s8, 128  ;;  %p790_p12 = scmp.lt.s32.totalorder %s22_s8, %s22_s8 }
  0x1c   :  { %p786_p11 = scmp.ne.s32.totalorder %s22_s8, %s785_s2  ;;  %p791_p13 = scmp.lt.s32.totalorder %s785_s2, %s785_s2 }
  0x1e   :  { %p792_p0 = por %p791_p13, %p790_p12 }
  0x20   :  { %p793_p1 = pnand %p792_p0, %p786_p11 }
  0x22   :  { %796 = shalt.err (!%p793_p1)
}
  0x23   :  { %24 = dma.hbm_to_vmem [thread:$0]  %s965_s1, 128, %s22_s8, [#allocation3]  }
  0x24   :  { %s797_s22 = scalar_lea.hbm %s967_s3, 6144 }
  0x25   :  { %p798_p2 = scmp.ne.s32.totalorder %s967_s3, %s797_s22  ;;  %p801_p3 = scmp.lt.u32.totalorder %s797_s22, %s967_s3 }
  0x27   :  { %p803_p4 = pnand %p801_p3, %p798_p2 }
  0x29   :  { %806 = shalt.err (!%p803_p4)
}
  0x2a   :  { %s807_s27 = scalar_lea.vmem %s43_s10, 6144  ;;  %p812_p6 = scmp.lt.s32.totalorder %s43_s10, %s43_s10 }
  0x2b   :  { %p808_p5 = scmp.ne.s32.totalorder %s43_s10, %s807_s27  ;;  %p813_p7 = scmp.lt.s32.totalorder %s807_s27, %s807_s27 }
  0x2d   :  { %p814_p8 = por %p813_p7, %p812_p6 }
  0x2f   :  { %p815_p9 = pnand %p814_p8, %p808_p5 }
  0x31   :  { %818 = shalt.err (!%p815_p9)
}
  0x32   :  { %s852_s1 = smov 128   ;;  %s853_s28 = smov 8  }
  0x33   :  { %48 = dma.hbm_to_vmem [thread:$0]  %s967_s3, 6144, %s43_s10, [#allocation6], %s852_s1, %s852_s1, %s853_s28  }
  0x34   :  { %841 = dma.done.wait [#allocation3], 128  }
  0x35   :  { %842 = vsyncadd [#allocation3], 4294967168 }
  0x36   :  { %843 = dma.done.wait [#allocation6], 12288  }
  0x37   :  { %844 = vsyncadd [#allocation6], 4294955008  ;;  %v854_v0 = vmov 0.0|0.0   ;;  %v855_v1 = vmov 0.0   ;;  %vm856_vm0 = vmmov 0   ;;  %v63_v2 = vld [vmem:[#allocation5 + $0x8] sm:$0xff] }
  0x38   :  { %656 = vmatprep.subr.bf16.mxu1 %v854_v0  ;;  %174 = vmatprep.mubr.f32.mxu0 %v855_v1  ;;  %v66_v3 = vld [vmem:[#allocation5 + $0x20] sm:$0xff]  ;;  %v65_v6 = vld [vmem:[#allocation5 + $0x18] sm:$0xff]  ;;  %v72_v8 = vld [vmem:[#allocation5 + $0x50] sm:$0xff] }
  0x39   :  { %586 = vmatprep.mubr.msk.f32.mxu1 %vm856_vm0, %v855_v1  ;;  %v62_v4 = vld [vmem:[#allocation5] sm:$0xff]  ;;  %v624_v5 = vpack.c.bf16 %v66_v3, %v63_v2  ;;  %v69_v7 = vld [vmem:[#allocation5 + $0x38] sm:$0xff]  ;;  %v68_v11 = vld [vmem:[#allocation5 + $0x30] sm:$0xff] }
  0x3a   :  { %v626_v9 = vpack.c.bf16 %v65_v6, %v62_v4  ;;  %v628_v10 = vpack.c.bf16 %v72_v8, %v69_v7  ;;  %v71_v12 = vld [vmem:[#allocation5 + $0x48] sm:$0xff]  ;;  %v64_v13 = vld [vmem:[#allocation5 + $0x10] sm:$0xff]  ;;  %v78_v16 = vld [vmem:[#allocation5 + $0x80] sm:$0xff] }
  0x3b   :  { %625 = vmatprep.subr.bf16.mxu0 %v624_v5  ;;  %v67_v14 = vld [vmem:[#allocation5 + $0x28] sm:$0xff]  ;;  %v630_v17 = vpack.c.bf16 %v71_v12, %v68_v11  ;;  %v70_v19 = vld [vmem:[#allocation5 + $0x40] sm:$0xff]  ;;  %v77_v22 = vld [vmem:[#allocation5 + $0x78] sm:$0xff] }
  0x3c   :  { %v75_v15 = vld [vmem:[#allocation5 + $0x68] sm:$0xff]  ;;  %627 = vmatpush1.bf16.msra.mxu0 %v626_v9  ;;  %v657_v18 = vpack.c.bf16 %v67_v14, %v64_v13  ;;  %v74_v21 = vld [vmem:[#allocation5 + $0x60] sm:$0xff]  ;;  %v73_v23 = vld [vmem:[#allocation5 + $0x58] sm:$0xff] }
  0x3d   :  { %629 = vmatprep.subr.bf16.mxu0 %v628_v10  ;;  %v632_v20 = vpack.c.bf16 %v78_v16, %v75_v15  ;;  %v660_v24 = vpack.c.bf16 %v73_v23, %v70_v19  ;;  %v81_v25 = vld [vmem:[#allocation5 + $0x98] sm:$0xff]  ;;  %v84_v26 = vld [vmem:[#allocation5 + $0xb0] sm:$0xff]  ;;  %v79_v28 = vld [vmem:[#allocation5 + $0x88] sm:$0xff]  ;;  %v634_v29 = vpack.c.bf16 %v77_v22, %v74_v21 }
  0x3e   :  { %658 = vmatpush3.bf16.msra.mxu1 %v657_v18  ;;  %v76_v27 = vld [vmem:[#allocation5 + $0x70] sm:$0xff]  ;;  %v636_v30 = vpack.c.bf16 %v84_v26, %v81_v25  ;;  %v83_v32 = vld [vmem:[#allocation5 + $0xa8] sm:$0xff]  ;;  %v90_v35 = vld [vmem:[#allocation5 + $0xe0] sm:$0xff] }
  0x3f   :  { %659 = vmatprep.subr.bf16.mxu1 %v854_v0  ;;  %v80_v31 = vld [vmem:[#allocation5 + $0x90] sm:$0xff]  ;;  %v663_v33 = vpack.c.bf16 %v79_v28, %v76_v27  ;;  %v87_v34 = vld [vmem:[#allocation5 + $0xc8] sm:$0xff]  ;;  %v82_v36 = vld [vmem:[#allocation5 + $0xa0] sm:$0xff] }
  0x40   :  { %631 = vmatpush1.bf16.msra.mxu0 %v630_v17  ;;  %v85_v37 = vld [vmem:[#allocation5 + $0xb8] sm:$0xff]  ;;  %v638_v38 = vpack.c.bf16 %v83_v32, %v80_v31  ;;  %v640_v39 = vpack.c.bf16 %v90_v35, %v87_v34  ;;  %v86_v40 = vld [vmem:[#allocation5 + $0xc0] sm:$0xff]  ;;  %v96_v44 = vld [vmem:[#allocation5 + $0x110] sm:$0xff] }
  0x41   :  { %633 = vmatprep.subr.bf16.mxu0 %v632_v20  ;;  %v89_v41 = vld [vmem:[#allocation5 + $0xd8] sm:$0xff]  ;;  %v666_v42 = vpack.c.bf16 %v85_v37, %v82_v36  ;;  %v88_v45 = vld [vmem:[#allocation5 + $0xd0] sm:$0xff]  ;;  %v91_v46 = vld [vmem:[#allocation5 + $0xe8] sm:$0xff] }
  0x42   :  { %661 = vmatpush3.bf16.msra.mxu1 %v660_v24  ;;  %v93_v43 = vld [vmem:[#allocation5 + $0xf8] sm:$0xff]  ;;  %v642_v47 = vpack.c.bf16 %v89_v41, %v86_v40  ;;  %v92_v49 = vld [vmem:[#allocation5 + $0xf0] sm:$0xff]  ;;  %v95_v50 = vld [vmem:[#allocation5 + $0x108] sm:$0xff]  ;;  %v669_v51 = vpack.c.bf16 %v91_v46, %v88_v45 }
  0x43   :  { %662 = vmatprep.subr.bf16.mxu1 %v854_v0  ;;  %v644_v48 = vpack.c.bf16 %v96_v44, %v93_v43  ;;  %v99_v52 = vld [vmem:[#allocation5 + $0x128] sm:$0xff]  ;;  %v102_v53 = vld [vmem:[#allocation5 + $0x140] sm:$0xff]  ;;  %v97_v55 = vld [vmem:[#allocation5 + $0x118] sm:$0xff]  ;;  %v646_v56 = vpack.c.bf16 %v95_v50, %v92_v49 }
  0x44   :  { %635 = vmatpush1.bf16.msra.mxu0 %v634_v29  ;;  %v94_v54 = vld [vmem:[#allocation5 + $0x100] sm:$0xff]  ;;  %v648_v57 = vpack.c.bf16 %v102_v53, %v99_v52  ;;  %v101_v59 = vld [vmem:[#allocation5 + $0x138] sm:$0xff]  ;;  %v108_v62 = vld [vmem:[#allocation5 + $0x170] sm:$0xff] }
  0x45   :  { %637 = vmatprep.subr.bf16.mxu0 %v636_v30  ;;  %v98_v58 = vld [vmem:[#allocation5 + $0x120] sm:$0xff]  ;;  %v672_v60 = vpack.c.bf16 %v97_v55, %v94_v54  ;;  %v105_v61 = vld [vmem:[#allocation5 + $0x158] sm:$0xff]  ;;  %v100_v63 = vld [vmem:[#allocation5 + $0x130] sm:$0xff] }
  0x46   :  { %664 = vmatpush3.bf16.msra.mxu1 %v663_v33  ;;  %v103_v2 = vld [vmem:[#allocation5 + $0x148] sm:$0xff]  ;;  %v650_v3 = vpack.c.bf16 %v101_v59, %v98_v58  ;;  %v652_v4 = vpack.c.bf16 %v108_v62, %v105_v61  ;;  %v104_v5 = vld [vmem:[#allocation5 + $0x150] sm:$0xff]  ;;  %v270_v8 = vld [vmem:[#allocation7 + $0x80] sm:$0xff] }
  0x47   :  { %665 = vmatprep.subr.bf16.mxu1 %v854_v0  ;;  %v107_v6 = vld [vmem:[#allocation5 + $0x168] sm:$0xff]  ;;  %v675_v7 = vpack.c.bf16 %v103_v2, %v100_v63  ;;  %v106_v10 = vld [vmem:[#allocation5 + $0x160] sm:$0xff]  ;;  %v109_v11 = vld [vmem:[#allocation5 + $0x178] sm:$0xff] }
  0x48   :  { %639 = vmatpush1.bf16.msra.mxu0 %v638_v38  ;;  %v271_v9 = vld [vmem:[#allocation7 + $0x88] sm:$0xff]  ;;  %v654_v12 = vpack.c.bf16 %v107_v6, %v104_v5  ;;  %v254_v14 = vld [vmem:[#allocation7] sm:$0xff]  ;;  %v678_v16 = vpack.c.bf16 %v109_v11, %v106_v10  ;;  %v272_v17 = vld [vmem:[#allocation7 + $0x90] sm:$0xff] }
  0x49   :  { %641 = vmatprep.subr.bf16.mxu0 %v640_v39  ;;  %v680_v13 = vpack.c.bf16 %v271_v9, %v270_v8  ;;  %v255_v15 = vld [vmem:[#allocation7 + $0x8] sm:$0xff]  ;;  %v273_v18 = vld [vmem:[#allocation7 + $0x98] sm:$0xff]  ;;  %v286_v19 = vld [vmem:[#allocation7 + $0x100] sm:$0xff] }
  0x4a   :  { %667 = vmatpush3.bf16.msra.mxu1 %v666_v42  ;;  %v287_v20 = vld [vmem:[#allocation7 + $0x108] sm:$0xff]  ;;  %v61_v21 = vld [vmem:[#allocation2] sm:$0xff]  ;;  %v682_v22 = vpack.c.bf16 %v255_v15, %v254_v14  ;;  %v684_v23 = vpack.c.bf16 %v273_v18, %v272_v17  ;;  %v256_v24 = vld [vmem:[#allocation7 + $0x10] sm:$0xff] }
  0x4b   :  { %668 = vmatprep.subr.bf16.mxu1 %v854_v0  ;;  %v257_v25 = vld [vmem:[#allocation7 + $0x18] sm:$0xff]  ;;  %v713_v26 = vpack.c.bf16 %v287_v20, %v286_v19  ;;  %v274_v27 = vld [vmem:[#allocation7 + $0xa0] sm:$0xff]  ;;  %v275_v28 = vld [vmem:[#allocation7 + $0xa8] sm:$0xff] }
  0x4c   :  { %643 = vmatpush1.bf16.msra.mxu0 %v642_v47  ;;  %v288_v29 = vld [vmem:[#allocation7 + $0x110] sm:$0xff]  ;;  %v289_v30 = vld [vmem:[#allocation7 + $0x118] sm:$0xff]  ;;  %v686_v31 = vpack.c.bf16 %v257_v25, %v256_v24  ;;  %v688_v32 = vpack.c.bf16 %v275_v28, %v274_v27  ;;  %v258_v33 = vld [vmem:[#allocation7 + $0x20] sm:$0xff] }
  0x4d   :  { %645 = vmatprep.subr.bf16.mxu0 %v644_v48  ;;  %v259_v34 = vld [vmem:[#allocation7 + $0x28] sm:$0xff]  ;;  %v716_v35 = vpack.c.bf16 %v289_v30, %v288_v29  ;;  %v276_v36 = vld [vmem:[#allocation7 + $0xb0] sm:$0xff]  ;;  %v277_v37 = vld [vmem:[#allocation7 + $0xb8] sm:$0xff]  ;;  %v442_v30 = vlaneseq }
  0x4e   :  { %670 = vmatpush3.bf16.msra.mxu1 %v669_v51  ;;  %v290_v38 = vld [vmem:[#allocation7 + $0x120] sm:$0xff]  ;;  %v291_v39 = vld [vmem:[#allocation7 + $0x128] sm:$0xff]  ;;  %v690_v40 = vpack.c.bf16 %v259_v34, %v258_v33  ;;  %v692_v41 = vpack.c.bf16 %v277_v37, %v276_v36  ;;  %v260_v42 = vld [vmem:[#allocation7 + $0x30] sm:$0xff] }
  0x4f   :  { %671 = vmatprep.subr.bf16.mxu1 %v854_v0  ;;  %v261_v43 = vld [vmem:[#allocation7 + $0x38] sm:$0xff]  ;;  %v719_v44 = vpack.c.bf16 %v291_v39, %v290_v38  ;;  %v278_v45 = vld [vmem:[#allocation7 + $0xc0] sm:$0xff]  ;;  %v279_v46 = vld [vmem:[#allocation7 + $0xc8] sm:$0xff] }
  0x50   :  { %647 = vmatpush1.bf16.msra.mxu0 %v646_v56  ;;  %v292_v47 = vld [vmem:[#allocation7 + $0x130] sm:$0xff]  ;;  %v293_v48 = vld [vmem:[#allocation7 + $0x138] sm:$0xff]  ;;  %v696_v49 = vpack.c.bf16 %v279_v46, %v278_v45  ;;  %v262_v50 = vld [vmem:[#allocation7 + $0x40] sm:$0xff] }
  0x51   :  { %649 = vmatprep.subr.bf16.mxu0 %v648_v57  ;;  %v263_v51 = vld [vmem:[#allocation7 + $0x48] sm:$0xff]  ;;  %v722_v52 = vpack.c.bf16 %v293_v48, %v292_v47  ;;  %v280_v53 = vld [vmem:[#allocation7 + $0xd0] sm:$0xff]  ;;  %v281_v54 = vld [vmem:[#allocation7 + $0xd8] sm:$0xff] }
  0x52   :  { %673 = vmatpush3.bf16.msra.mxu1 %v672_v60  ;;  %v294_v55 = vld [vmem:[#allocation7 + $0x140] sm:$0xff]  ;;  %v295_v56 = vld [vmem:[#allocation7 + $0x148] sm:$0xff]  ;;  %v698_v57 = vpack.c.bf16 %v263_v51, %v262_v50  ;;  %v700_v58 = vpack.c.bf16 %v281_v54, %v280_v53  ;;  %v264_v59 = vld [vmem:[#allocation7 + $0x50] sm:$0xff] }
  0x53   :  { %674 = vmatprep.subr.bf16.mxu1 %v854_v0  ;;  %v265_v60 = vld [vmem:[#allocation7 + $0x58] sm:$0xff]  ;;  %v725_v61 = vpack.c.bf16 %v295_v56, %v294_v55  ;;  %v282_v62 = vld [vmem:[#allocation7 + $0xe0] sm:$0xff]  ;;  %v283_v63 = vld [vmem:[#allocation7 + $0xe8] sm:$0xff] }
  0x54   :  { %651 = vmatpush1.bf16.msra.mxu0 %v650_v3  ;;  %v296_v2 = vld [vmem:[#allocation7 + $0x150] sm:$0xff]  ;;  %v297_v3 = vld [vmem:[#allocation7 + $0x158] sm:$0xff]  ;;  %v704_v5 = vpack.c.bf16 %v283_v63, %v282_v62  ;;  %v266_v6 = vld [vmem:[#allocation7 + $0x60] sm:$0xff] }
  0x55   :  { %653 = vmatprep.subr.bf16.mxu0 %v652_v4  ;;  %v702_v4 = vpack.c.bf16 %v265_v60, %v264_v59  ;;  %v728_v8 = vpack.c.bf16 %v297_v3, %v296_v2  ;;  %v298_v10 = vld [vmem:[#allocation7 + $0x160] sm:$0xff]  ;;  %v299_v11 = vld [vmem:[#allocation7 + $0x168] sm:$0xff]  ;;  %v285_v14 = vld [vmem:[#allocation7 + $0xf8] sm:$0xff] }
  0x56   :  { %676 = vmatpush3.bf16.msra.mxu1 %v675_v7  ;;  %v267_v7 = vld [vmem:[#allocation7 + $0x68] sm:$0xff]  ;;  %v269_v17 = vld [vmem:[#allocation7 + $0x78] sm:$0xff]  ;;  %v300_v19 = vld [vmem:[#allocation7 + $0x170] sm:$0xff] }
  0x57   :  { %677 = vmatprep.subr.bf16.mxu1 %v854_v0  ;;  %v706_v9 = vpack.c.bf16 %v267_v7, %v266_v6  ;;  %v301_v20 = vld [vmem:[#allocation7 + $0x178] sm:$0xff] }
  0x58   :  { %655 = vmatpush1.bf16.msra.mxu0 %v654_v12  ;;  %v731_v12 = vpack.c.bf16 %v299_v11, %v298_v10  ;;  %v456_v39 = vld [vmem:[%s968_s4] sm:$0xff]  ;;  %s858_s4 = smov [#allocation8]  }
  0x59   :  { %681 = vmatprep.subr.bf16.mxu0 %v680_v13  ;;  %v284_v13 = vld [vmem:[#allocation7 + $0xf0] sm:$0xff]  ;;  %s475_s8 = sshll.u32 %s858_s4, 4  ;;  %s476_s8 = int_to_ptr.vmem [resolvable:$true] %s475_s8 }
  0x5a   :  { %679 = vmatpush3.bf16.msra.mxu1 %v678_v16  ;;  %v708_v15 = vpack.c.bf16 %v285_v14, %v284_v13  ;;  %v268_v16 = vld [vmem:[#allocation7 + $0x70] sm:$0xff]  ;;  %s819_s9 = scalar_lea.vmem %s476_s8, 128  ;;  %p824_p11 = scmp.lt.s32.totalorder %s476_s8, %s476_s8 }
  0x5b   :  { %175 = vmatmul.mubr.f32.vlgmr.msra.gmra.mrb[0].mxu0 %v61_v21  ;;  %712 = vmatprep.subr.bf16.mxu1 %v854_v0  ;;  %v710_v18 = vpack.c.bf16 %v269_v17, %v268_v16  ;;  %p820_p10 = scmp.ne.s32.totalorder %s476_s8, %s819_s9  ;;  %p825_p12 = scmp.lt.s32.totalorder %s819_s9, %s819_s9 }
  0x5c   :  { %683 = vmatpush3.bf16.msra.mxu0 %v682_v22  ;;  %v60_v22 = vld [vmem:[%s964_s0] sm:$0xff] }
  0x5d   :  { %587 = vmatmul.mubr.f32.vlgmr.msra.gmra.mrb[0].mxu1 %v61_v21  ;;  %685 = vmatprep.subr.bf16.mxu0 %v684_v23  ;;  %v734_v21 = vpack.c.bf16 %v301_v20, %v300_v19  ;;  %p826_p13 = por %p825_p12, %p824_p11 }
  0x5e   :  { %714 = vmatpush3.bf16.msra.mxu1 %v713_v26  ;;  %621 = vmatprep.mubr.msk.f32.mxu1 %vm856_vm0, %v855_v1  ;;  %v694_v1 = vpack.c.bf16 %v261_v43, %v260_v42 }
  0x5f   :  { %715 = vmatprep.subr.bf16.mxu1 %v854_v0  ;;  %p827_p0 = pnand %p826_p13, %p820_p10 }
  0x60   :  { %687 = vmatpush3.bf16.msra.mxu0 %v686_v31  ;;  %v443_v31 = vand.u32 127, %v442_v30 }
  0x61   :  { %689 = vmatprep.subr.bf16.mxu0 %v688_v32 }
  0x62   :  { %717 = vmatpush3.bf16.msra.mxu1 %v716_v35  ;;  %vm444_vm1 = vcmp.lt.s32.totalorder %v443_v31, 3  ;;  %vm465_vm3 = vcmp.eq.s32.totalorder %v443_v31, 3 }
  0x63   :  { %718 = vmatprep.subr.bf16.mxu1 %v854_v0 }
  0x64   :  { %691 = vmatpush3.bf16.msra.mxu0 %v690_v40 }
  0x65   :  { %693 = vmatprep.subr.bf16.mxu0 %v692_v41 }
  0x66   :  { %720 = vmatpush3.bf16.msra.mxu1 %v719_v44 }
  0x67   :  { %721 = vmatprep.subr.bf16.mxu1 %v854_v0 }
  0x68   :  { %695 = vmatpush3.bf16.msra.mxu0 %v694_v1 }
  0x69   :  { %697 = vmatprep.subr.bf16.mxu0 %v696_v49 }
  0x6a   :  { %723 = vmatpush3.bf16.msra.mxu1 %v722_v52 }
  0x6b   :  { %724 = vmatprep.subr.bf16.mxu1 %v854_v0 }
  0x6c   :  { %699 = vmatpush3.bf16.msra.mxu0 %v698_v57 }
  0x6d   :  { %701 = vmatprep.subr.bf16.mxu0 %v700_v58 }
  0x6e   :  { %726 = vmatpush3.bf16.msra.mxu1 %v725_v61 }
  0x6f   :  { %727 = vmatprep.subr.bf16.mxu1 %v854_v0 }
  0x70   :  { %703 = vmatpush3.bf16.msra.mxu0 %v702_v4 }
  0x71   :  { %705 = vmatprep.subr.bf16.mxu0 %v704_v5 }
  0x72   :  { %729 = vmatpush3.bf16.msra.mxu1 %v728_v8 }
  0x73   :  { %730 = vmatprep.subr.bf16.mxu1 %v854_v0 }
  0x74   :  { %707 = vmatpush3.bf16.msra.mxu0 %v706_v9 }
  0x75   :  { %709 = vmatprep.subr.bf16.mxu0 %v708_v15 }
  0x76   :  { %732 = vmatpush3.bf16.msra.mxu1 %v731_v12 }
  0x77   :  { %733 = vmatprep.subr.bf16.mxu1 %v854_v0  ;;  %v857_v0 = vmov 0  }
  0x78   :  { %711 = vmatpush3.bf16.msra.mxu0 %v710_v18  ;;  %748 = vset.pattern.permute.xlu0 %v857_v0 }
  0x7a   :  { %735 = vmatpush3.bf16.msra.mxu1 %v734_v21 }
 0x12e   :  { %v176_v23 = vpop.f32.mrb[0].mxu0 }
 0x12f   :  { %v178_v24 = vpop.f32.mrb[1].mxu0  ;;  %v251_v27 = vmul.f32 %v176_v23, %v60_v22 }
 0x130   :  { %v252_v25 = vmul.f32 %v178_v24, %v60_v22  ;;  %v247_v26 = vpop.f32.mrb[0].mxu1 }
 0x131   :  { %v253_v28 = vmul.f32 %v247_v26, %v60_v22  ;;  %v588_v29 = vpop.f32.mrb[1].mxu1 }
 0x132   :  { %366 = vmatprep.mubr.f32.mxu0 %v252_v25 }
 0x133   :  { %367 = vmatmul.mubr.f32.vlgmr.msra.gmra.mrb[2].mxu0 %v251_v27  ;;  %622 = vmatmul.mubr.f32.vlgmr.msra.gmra.mrb[2].mxu1 %v253_v28 }
 0x206   :  { %v534_v32 = vpop.f32.mrb[2].mxu0  ;;  %v438_v33 = vpop.f32.mrb[2].mxu1 }
 0x207   :  { %v535_v34 = vpop.f32.mrb[3].mxu0  ;;  %v623_v35 = vpop.f32.mrb[3].mxu1 }
 0x208   :  { %v536_v36 = vadd.f32 %v535_v34, %v534_v32 }
 0x20a   :  { %v439_v37 = vadd.f32 %v536_v36, %v438_v33 }
 0x20c   :  { %v445_v38 = vsel %vm444_vm1, %v439_v37, -inf }
 0x20d   :  { %446 = vmax.xlane.f32.xlu0 %v445_v38 }
 0x223   :  { %458 = vperm.xlu0 %748, %v456_v39  }
 0x29a   :  { %v447_v40 = vpop.xlane.xlu0 %446 }
 0x29b   :  { %v448_v41 = vsub.f32 %v445_v38, %v447_v40 }
 0x29d   :  { %v449_v42 = vmul.f32 1.442695, %v448_v41 }
 0x29f   :  { %749 = vpow2.f32 %v449_v42 }
 0x2a2   :  { %v459_v43 = vpop.permute.xlu0 %458 }
 0x2a3   :  { %vm460_vm2 = vcmp.eq.s32.totalorder %v443_v31, %v459_v43 }
 0x2a4   :  { %v461_v45 = vsel %vm460_vm2, %v439_v37, 0.0 }
 0x2a9   :  { %v750_v44 = vpop.eup %749 }
 0x2aa   :  { %451 = vadd.xlane.f32.xlu1 %v750_v44 }
 0x2ae   :  { %462 = vadd.xlane.f32.xlu1 %v461_v45 }
 0x337   :  { %v452_v46 = vpop.xlane.xlu1 %451 }
 0x338   :  { %751 = vlog2.f32 %v452_v46 }
 0x33b   :  { %v463_v49 = vpop.xlane.xlu1 %462 }
 0x342   :  { %v752_v47 = vpop.eup %751 }
 0x343   :  { %v454_v48 = vmul.f32 0.6931472, %v752_v47 }
 0x345   :  { %v455_v1 = vadd.f32 %v454_v48, %v447_v40 }
 0x347   :  { %v464_v50 = vsub.f32 %v455_v1, %v463_v49 }
 0x349   :  { %v466_v51 = vsel %vm465_vm3, %v464_v50, 0.0 }
 0x34a   :  { %v467_v52 = vadd.f32 %v466_v51, %v439_v37 }
 0x34c   :  { %468 = vst [vmem:[#allocation8] sm:$0xff] %v467_v52 }
 0x34d   :  { %830 = shalt.err (!%p827_p0)
}
 0x34e   :  { %s831_s12 = scalar_lea.hbm %s969_s5, 128 }
 0x34f   :  { %p832_p1 = scmp.ne.s32.totalorder %s969_s5, %s831_s12  ;;  %p835_p2 = scmp.lt.u32.totalorder %s831_s12, %s969_s5 }
 0x351   :  { %p837_p3 = pnand %p835_p2, %p832_p1 }
 0x353   :  { %840 = shalt.err (!%p837_p3)
}
 0x354   :  { %478 = dma.vmem_to_hbm [thread:$0]  %s476_s8, 128, %s969_s5, [#allocation4]  }
 0x355   :  { %845 = dma.done.wait [#allocation4], 128  }
 0x356   :  { %846 = vsyncadd [#allocation4], 4294967168 }
 0x357   :  { %482 = vsyncpa [#allocation3], 1 }
 0x358   :  { %483 = vsyncpa [#allocation6], 1 }
 0x359   :  { %484 = vsyncpa [#allocation4], 1 }

</bundles_post_ra>
